<compile_context>
chip_gen: v5e
topology: v5e:2x2
jax: 0.10.0
libtpu: 0.0.40
codegen_flags: <defaults>
</compile_context>

<pallas_src>
import functools

import jax
import jax.numpy as jnp
from jax.experimental import pallas as pl
from jax.experimental.pallas import tpu as pltpu

MIB = 1024 * 1024
LANE = 128


def _round_up(x, m):
    return ((x + m - 1) // m) * m


def _sublane_multiple(dtype):
    """Second-to-last block dim must match the packed sublane tiling."""
    itemsize = jnp.dtype(dtype).itemsize
    if itemsize >= 4:
        return 8
    if itemsize == 2:
        return 16
    return 32


def _vmem_capacity_bytes():
    try:
        cap = int(pltpu.get_tpu_info().vmem_capacity_bytes)
        if cap > 0:
            return cap
    except Exception:
        pass
    return 64 * MIB  # conservative default: v7x per-TensorCore VMEM


def _pick_tile_c(B, C, T_blk, sub, block_budget):
    """Largest channel tile (dtype-sublane multiple, or full C) whose f32 slab
    stays under the per-block budget, capped so the channel grid keeps >= 2
    steps whenever C is large enough (v7x megacore)."""
    budget_tile = max(block_budget // max(B * T_blk * 4, 1), 1)
    if C >= 2 * sub:
        budget_tile = min(budget_tile, _round_up(pl.cdiv(C, 2), sub))
    if budget_tile >= C:
        return C                       # full channel extent (always legal)
    return max((budget_tile // sub) * sub, min(sub, C))


# ---------------------------------------------------------------------------
# Main path: fused single-pass BatchNorm1d(affine=False, training) + FiLM.
# One grid step sees a (B, tile_c, T_blk) slab of x plus (B, tile_c, 1) g/beta.
# ---------------------------------------------------------------------------
def _film_kernel(x_ref, g_ref, b_ref, o_ref, *, eps, inv_n):
    x = x_ref[...].astype(jnp.float32)                   # (B, Ct, Tp)
    # Single-pass per-channel batch statistics over (batch, time), f32 accum.
    s1 = jnp.sum(x, axis=(0, 2), keepdims=True)          # (1, Ct, 1)
    s2 = jnp.sum(x * x, axis=(0, 2), keepdims=True)      # (1, Ct, 1)
    mean = s1 * inv_n
    var = s2 * inv_n - mean * mean                       # biased variance
    # Fold BN + FiLM into one multiply-add per element.
    a = g_ref[...] * jax.lax.rsqrt(var + eps)            # (B, Ct, 1)
    s = b_ref[...] - mean * a                            # (B, Ct, 1)
    o_ref[...] = (x * a + s).astype(o_ref.dtype)


# ---------------------------------------------------------------------------
# Fallback path (huge B*T): two passes gridded over (C, T).
# ---------------------------------------------------------------------------
def _film_stats_kernel(x_ref, s1_ref, s2_ref, *, tile_t, t_valid, needs_mask):
    t = pl.program_id(1)

    @pl.when(t == 0)
    def _():
        s1_ref[...] = jnp.zeros_like(s1_ref)
        s2_ref[...] = jnp.zeros_like(s2_ref)

    x = x_ref[...].astype(jnp.float32)
    if needs_mask:
        # Zero the out-of-range time tail so OOB garbage never enters the sums.
        pos = t * tile_t + jax.lax.broadcasted_iota(jnp.int32, x.shape, 2)
        x = jnp.where(pos < t_valid, x, 0.0)
    s1_ref[...] += jnp.sum(x, axis=(0, 2), keepdims=True)
    s2_ref[...] += jnp.sum(x * x, axis=(0, 2), keepdims=True)


def _film_apply_kernel(x_ref, g_ref, b_ref, s1_ref, s2_ref, o_ref, *, eps, inv_n):
    x = x_ref[...].astype(jnp.float32)
    mean = s1_ref[...] * inv_n
    var = s2_ref[...] * inv_n - mean * mean
    a = g_ref[...] * jax.lax.rsqrt(var + eps)
    s = b_ref[...] - mean * a
    o_ref[...] = (x * a + s).astype(o_ref.dtype)


def _film_two_pass(x, g, beta, *, eps, inv_n, sub, block_budget, vmem_limit):
    B, C, T = x.shape
    tile_c = C if C <= sub else sub
    tile_t = (block_budget // max(B * tile_c * 4, 1) // LANE) * LANE
    if T >= LANE:
        tile_t = max(LANE, min(tile_t, (T // LANE) * LANE))
    else:
        tile_t = T
    n_c, n_t = pl.cdiv(C, tile_c), pl.cdiv(T, tile_t)
    needs_mask = (T % tile_t) != 0

    s1, s2 = pl.pallas_call(
        functools.partial(_film_stats_kernel, tile_t=tile_t, t_valid=T,
                          needs_mask=needs_mask),
        out_shape=(jax.ShapeDtypeStruct((1, C, 1), jnp.float32),
                   jax.ShapeDtypeStruct((1, C, 1), jnp.float32)),
        grid_spec=pltpu.PrefetchScalarGridSpec(
            num_scalar_prefetch=0,
            grid=(n_c, n_t),
            in_specs=[pl.BlockSpec((B, tile_c, tile_t), lambda c, t: (0, c, t))],
            out_specs=[pl.BlockSpec((1, tile_c, 1), lambda c, t: (0, c, 0)),
                       pl.BlockSpec((1, tile_c, 1), lambda c, t: (0, c, 0))],
        ),
        compiler_params=pltpu.CompilerParams(
            dimension_semantics=("parallel", "arbitrary"),
            vmem_limit_bytes=vmem_limit,
        ),
    )(x)

    return pl.pallas_call(
        functools.partial(_film_apply_kernel, eps=eps, inv_n=inv_n),
        out_shape=jax.ShapeDtypeStruct((B, C, T), x.dtype),
        grid_spec=pltpu.PrefetchScalarGridSpec(
            num_scalar_prefetch=0,
            grid=(n_c, n_t),
            in_specs=[
                pl.BlockSpec((B, tile_c, tile_t), lambda c, t: (0, c, t)),
                pl.BlockSpec((B, tile_c, 1), lambda c, t: (0, c, 0)),
                pl.BlockSpec((B, tile_c, 1), lambda c, t: (0, c, 0)),
                pl.BlockSpec((1, tile_c, 1), lambda c, t: (0, c, 0)),
                pl.BlockSpec((1, tile_c, 1), lambda c, t: (0, c, 0)),
            ],
            out_specs=pl.BlockSpec((B, tile_c, tile_t), lambda c, t: (0, c, t)),
        ),
        compiler_params=pltpu.CompilerParams(
            dimension_semantics=("parallel", "parallel"),
            vmem_limit_bytes=vmem_limit,
        ),
    )(x, g, beta, s1, s2)


# ---------------------------------------------------------------------------
# Public wrapper.
# ---------------------------------------------------------------------------
def film_forward(x, cond, w, b, *, eps=1e-5):
    """x: (B, C, T), cond: (B, 1, cond_dim), w: (2C, cond_dim), b: (2C,)."""
    B, C, T = x.shape

    # --- adaptor Linear (tiny; plain jnp, XLA fuses with chunk/reshape) -----
    proj = (cond.reshape(B, -1).astype(jnp.float32)
            @ jnp.asarray(w, jnp.float32).T
            + jnp.asarray(b, jnp.float32))                      # (B, 2C)
    g = proj[:, :C].reshape(B, C, 1)      # channels on sublanes for the kernel
    beta = proj[:, C:].reshape(B, C, 1)

    # --- generation-aware sizing --------------------------------------------
    sub = _sublane_multiple(x.dtype)
    cap = _vmem_capacity_bytes()
    block_budget = min(max(cap // 8, 4 * MIB), 12 * MIB)
    vmem_limit = int(min(cap * 3 // 4, 96 * MIB))

    # Lane-dense stores: pad short T to a multiple of 128 (exact: zeros add
    # nothing to sum/sumsq, divisor is the valid count).  Long T amortizes the
    # masked tail and would pay more for the wrapper pad/slice copies.
    pad_t = (T % LANE != 0) and (T <= 8 * LANE)
    T_blk = _round_up(T, LANE) if pad_t else T
    inv_n = 1.0 / float(B * T)

    # Feasibility of the single-pass channel-gridded kernel: minimum channel
    # slab (double-buffered in/out + f32 upcast temps) must fit under VMEM.
    min_tile_c = C if C <= sub else sub
    if B * min_tile_c * T_blk * 4 * 6 > vmem_limit:
        return _film_two_pass(x, g, beta, eps=eps, inv_n=inv_n, sub=sub,
                              block_budget=block_budget, vmem_limit=vmem_limit)

    x_in = jnp.pad(x, ((0, 0), (0, 0), (0, T_blk - T))) if pad_t else x
    tile_c = _pick_tile_c(B, C, T_blk, sub, block_budget)
    grid = (pl.cdiv(C, tile_c),)

    out = pl.pallas_call(
        functools.partial(_film_kernel, eps=eps, inv_n=inv_n),
        out_shape=jax.ShapeDtypeStruct((B, C, T_blk), x.dtype),
        grid_spec=pltpu.PrefetchScalarGridSpec(
            num_scalar_prefetch=0,
            grid=grid,
            in_specs=[
                # TODO(synk): sweep pipeline_mode=pl.Buffered(3) on x if VMEM
                # headroom remains after the block-size choice.
                pl.BlockSpec((B, tile_c, T_blk), lambda c: (0, c, 0)),  # x
                pl.BlockSpec((B, tile_c, 1), lambda c: (0, c, 0)),      # g
                pl.BlockSpec((B, tile_c, 1), lambda c: (0, c, 0)),      # beta
            ],
            out_specs=pl.BlockSpec((B, tile_c, T_blk), lambda c: (0, c, 0)),
        ),
        compiler_params=pltpu.CompilerParams(
            dimension_semantics=("parallel",),      # channel tiles independent
            vmem_limit_bytes=vmem_limit,
        ),
        cost_estimate=pl.CostEstimate(
            flops=int(7 * B * C * T_blk),
            transcendentals=int(C),
            bytes_accessed=int(2 * B * C * T_blk * x.dtype.itemsize),
        ),
    )(x_in, g, beta)

    return out[:, :, :T] if pad_t else out


if __name__ == "__main__":
    # Small shapes consistent with the module's forward:
    #   x: (B, C, T), cond: (B, 1, cond_dim)
    B, C, T, COND_DIM = 2, 4, 16, 8

    key = jax.random.PRNGKey(0)
    kx, kc, kw, kb = jax.random.split(key, 4)

    x = jax.random.normal(kx, (B, C, T), dtype=jnp.float32)
    cond = jax.random.normal(kc, (B, 1, COND_DIM), dtype=jnp.float32)

    # Deterministic Linear(cond_dim, 2C) params, PyTorch-style uniform init.
    bound = 1.0 / (COND_DIM ** 0.5)
    w = jax.random.uniform(kw, (2 * C, COND_DIM), jnp.float32, -bound, bound)
    b = jax.random.uniform(kb, (2 * C,), jnp.float32, -bound, bound)

    out = film_forward(x, cond, w, b)
    jax.block_until_ready(out)

    # Pure-JAX reference check (two-pass statistics, outside Pallas).
    proj = cond.reshape(B, -1) @ w.T + b
    g_ref, beta_ref = proj[:, :C], proj[:, C:]
    mean = x.mean(axis=(0, 2), keepdims=True)
    var = ((x - mean) ** 2).mean(axis=(0, 2), keepdims=True)
    ref = (x - mean) / jnp.sqrt(var + 1e-5) * g_ref[:, :, None] + beta_ref[:, :, None]
    assert out.shape == ref.shape
    assert jnp.allclose(out, ref, atol=1e-4, rtol=1e-4), "mismatch vs reference"

    print("KERNEL_OK")
</pallas_src>

<mosaic_0001>
module attributes {stable_mosaic.version = 11 : i64} {
  func.func @_film_kernel(%arg0: i32, %arg1: memref<2x4x128xf32, #tpu.memory_space<vmem>>, %arg2: memref<2x4x1xf32, #tpu.memory_space<vmem>>, %arg3: memref<2x4x1xf32, #tpu.memory_space<vmem>>, %arg4: memref<2x4x128xf32, #tpu.memory_space<vmem>>) attributes {dimension_semantics = [#tpu.dimension_semantics<parallel>], iteration_bounds = array<i64: 1>, scalar_prefetch = 0 : i64, scratch_operands = 0 : i64, tpu.core_type = #tpu.core_type<tc>, window_params = [{transform_indices = @transform_0, window_bounds = array<i64: 2, 4, 128>}, {transform_indices = @transform_1, window_bounds = array<i64: 2, 4, 1>}, {transform_indices = @transform_2, window_bounds = array<i64: 2, 4, 1>}, {transform_indices = @transform_3, window_bounds = array<i64: 2, 4, 128>}]} {
    %c0 = arith.constant 0 : index
    %c0_0 = arith.constant 0 : index
    %c0_1 = arith.constant 0 : index
    %0 = vector.load %arg1[%c0, %c0_0, %c0_1] : memref<2x4x128xf32, #tpu.memory_space<vmem>>, vector<2x4x128xf32>
    %cst = arith.constant dense<0.000000e+00> : vector<4xf32>
    %1 = vector.multi_reduction <add>, %0, %cst [0, 2] : vector<2x4x128xf32> to vector<4xf32>
    %2 = vector.shape_cast %1 : vector<4xf32> to vector<1x4x1xf32>
    %3 = arith.mulf %0, %0 : vector<2x4x128xf32>
    %cst_2 = arith.constant dense<0.000000e+00> : vector<4xf32>
    %4 = vector.multi_reduction <add>, %3, %cst_2 [0, 2] : vector<2x4x128xf32> to vector<4xf32>
    %5 = vector.shape_cast %4 : vector<4xf32> to vector<1x4x1xf32>
    %cst_3 = arith.constant 3.125000e-02 : f32
    %6 = vector.broadcast %cst_3 : f32 to vector<1x4x1xf32>
    %7 = arith.mulf %2, %6 : vector<1x4x1xf32>
    %cst_4 = arith.constant 3.125000e-02 : f32
    %8 = vector.broadcast %cst_4 : f32 to vector<1x4x1xf32>
    %9 = arith.mulf %5, %8 : vector<1x4x1xf32>
    %10 = arith.mulf %7, %7 : vector<1x4x1xf32>
    %11 = arith.subf %9, %10 : vector<1x4x1xf32>
    %c0_5 = arith.constant 0 : index
    %c0_6 = arith.constant 0 : index
    %c0_7 = arith.constant 0 : index
    %12 = vector.load %arg2[%c0_5, %c0_6, %c0_7] : memref<2x4x1xf32, #tpu.memory_space<vmem>>, vector<2x4x1xf32>
    %cst_8 = arith.constant 9.99999974E-6 : f32
    %13 = vector.broadcast %cst_8 : f32 to vector<1x4x1xf32>
    %14 = arith.addf %11, %13 : vector<1x4x1xf32>
    %15 = math.rsqrt %14 : vector<1x4x1xf32>
    %16 = vector.broadcast %15 : vector<1x4x1xf32> to vector<2x4x1xf32>
    %17 = arith.mulf %12, %16 : vector<2x4x1xf32>
    %c0_9 = arith.constant 0 : index
    %c0_10 = arith.constant 0 : index
    %c0_11 = arith.constant 0 : index
    %18 = vector.load %arg3[%c0_9, %c0_10, %c0_11] : memref<2x4x1xf32, #tpu.memory_space<vmem>>, vector<2x4x1xf32>
    %19 = vector.broadcast %7 : vector<1x4x1xf32> to vector<2x4x1xf32>
    %20 = arith.mulf %19, %17 : vector<2x4x1xf32>
    %21 = arith.subf %18, %20 : vector<2x4x1xf32>
    %22 = vector.broadcast %17 : vector<2x4x1xf32> to vector<2x4x128xf32>
    %23 = arith.mulf %0, %22 : vector<2x4x128xf32>
    %24 = vector.broadcast %21 : vector<2x4x1xf32> to vector<2x4x128xf32>
    %25 = arith.addf %23, %24 : vector<2x4x128xf32>
    %c0_12 = arith.constant 0 : index
    %c0_13 = arith.constant 0 : index
    %c0_14 = arith.constant 0 : index
    %26 = vector.load %arg4[%c0_12, %c0_13, %c0_14] : memref<2x4x128xf32, #tpu.memory_space<vmem>>, vector<2x4x128xf32>
    tpu.vector_store %arg4[%c0_12, %c0_13, %c0_14], %25 {strides = array<i32>} : memref<2x4x128xf32, #tpu.memory_space<vmem>>, vector<2x4x128xf32>,
    return
  }
  func.func @transform_0(%arg0: i32) -> (i32, i32, i32) {
    %c0_i32 = arith.constant 0 : i32
    %c0_i32_0 = arith.constant 0 : i32
    %c0_i32_1 = arith.constant 0 : i32
    return %c0_i32, %arg0, %c0_i32_0 : i32, i32, i32
  }
  func.func @transform_1(%arg0: i32) -> (i32, i32, i32) {
    %c0_i32 = arith.constant 0 : i32
    %c0_i32_0 = arith.constant 0 : i32
    %c0_i32_1 = arith.constant 0 : i32
    return %c0_i32, %arg0, %c0_i32_0 : i32, i32, i32
  }
  func.func @transform_2(%arg0: i32) -> (i32, i32, i32) {
    %c0_i32 = arith.constant 0 : i32
    %c0_i32_0 = arith.constant 0 : i32
    %c0_i32_1 = arith.constant 0 : i32
    return %c0_i32, %arg0, %c0_i32_0 : i32, i32, i32
  }
  func.func @transform_3(%arg0: i32) -> (i32, i32, i32) {
    %c0_i32 = arith.constant 0 : i32
    %c0_i32_0 = arith.constant 0 : i32
    %c0_i32_1 = arith.constant 0 : i32
    return %c0_i32, %arg0, %c0_i32_0 : i32, i32, i32
  }
}

</mosaic_0001>

<bundles_post_ra>
// kernel: tpu_custom_call.1
= control target key start
LH: loop header
LB: loop body
LE: loop exit
PB: predicated region body
PF: predicated region fallthrough
CT: control target
= control target key end

     0   :  { %vm17_vm0 = vcmask 1043456   ;;  %s179_s0 = inlined_call_operand.vmem [shape: f32[2,4,128], index: 0, kind: input, shape index: {}]   ;;  %s180_s1 = inlined_call_operand.vmem [shape: f32[2,4,1], index: 1, kind: input, shape index: {}]   ;;  %s181_s2 = inlined_call_operand.vmem [shape: f32[2,4,1], index: 2, kind: input, shape index: {}]   ;;  %s182_s3 = inlined_call_operand.hbm [shape: f32[2,4,128], index: 3, kind: output, shape index: {}]  }
   0x1   :  { %v15_v0 = vld [vmem:[%s179_s0] sm:$0xf]  ;;  %v16_v1 = vld [vmem:[%s179_s0 + $0x4] sm:$0xf] }
   0x2   :  { %v18_v2 = vsel %vm17_vm0, %v15_v0, 0.0  ;;  %v19_v3 = vsel %vm17_vm0, %v16_v1, 0.0  ;;  %v23_v4 = vmul.f32 %v15_v0, %v15_v0  ;;  %v24_v5 = vmul.f32 %v16_v1, %v16_v1 }
   0x3   :  { %8 = vsyncpa [#allocation3], 0  ;;  %v20_v6 = vadd.f32 %v19_v3, %v18_v2  ;;  %v134_v10 = vmov 0   ;;  %v34_v23 = vld [vmem:[%s180_s1] sm:$0xf]  ;;  %s87_s26 = sshll.u32 %s182_s3, 4  ;;  %s88_s26 = int_to_ptr.hbm [resolvable:$true] %s87_s26 }
   0x4   :  { %v25_v7 = vsel %vm17_vm0, %v23_v4, 0.0  ;;  %v26_v8 = vsel %vm17_vm0, %v24_v5, 0.0  ;;  %103 = vset.pattern.permute.xlu1 %v134_v10  ;;  %104 = vset.pattern.permute.xlu2 %v134_v10  ;;  %v35_v27 = vld [vmem:[%s180_s1 + $0x4] sm:$0xf]  ;;  %v49_v28 = vld [vmem:[%s181_s2] sm:$0xf] }
   0x5   :  { %21 = vadd.xlane.f32.xlu0 %v20_v6  ;;  %v27_v9 = vadd.f32 %v26_v8, %v25_v7  ;;  %v50_v33 = vld [vmem:[%s181_s2 + $0x4] sm:$0xf]  ;;  %s135_s1 = smov [#allocation2]   ;;  %s136_s2 = smov 64  }
   0x6   :  { %105 = vset.pattern.permute.xlu0 %v134_v10  ;;  %s85_s23 = sshll.u32 %s135_s1, 4  ;;  %s137_s27 = smov 4   ;;  %s86_s23 = int_to_ptr.vmem [resolvable:$true] %s85_s23 }
   0xd   :  { %28 = vadd.xlane.f32.xlu0 %v27_v9 }
  0x78   :  { %v22_v11 = vpop.xlane.xlu0 %21 }
  0x79   :  { %v30_v12 = vmul.f32 0.03125, %v22_v11 }
  0x7b   :  { %v32_v14 = vmul.f32 %v30_v12, %v30_v12 }
  0x80   :  { %v29_v13 = vpop.xlane.xlu0 %28 }
  0x81   :  { %v31_v15 = vmul.f32 0.03125, %v29_v13 }
  0x83   :  { %v33_v16 = vsub.f32 %v31_v15, %v32_v14 }
  0x85   :  { %v36_v17 = vadd.f32 1e-05, %v33_v16 }
  0x87   :  { %106 = vrsqrt.f32 %v36_v17  ;;  %vm43_vm2 = vweird.f32 %v36_v17 }
  0x8d   :  { %v107_v18 = vpop.eup %106 }
  0x8e   :  { %v38_v19 = vmul.f32 %v107_v18, %v36_v17  ;;  %vm44_vm1 = vweird.f32 %v107_v18 }
  0x8f   :  { %vm45_vm3 = vmor %vm43_vm2, %vm44_vm1 }
  0x90   :  { %v39_v20 = vmul.f32 %v107_v18, %v38_v19 }
  0x92   :  { %v40_v21 = vmul.f32 0.5, %v39_v20 }
  0x94   :  { %v41_v22 = vsub.f32 1.5, %v40_v21 }
  0x96   :  { %v42_v24 = vmul.f32 %v107_v18, %v41_v22 }
  0x98   :  { %v46_v25 = vsel %vm45_vm3, %v107_v18, %v42_v24 }
  0x99   :  { %v47_v26 = vmul.f32 %v46_v25, %v34_v23  ;;  %v48_v30 = vmul.f32 %v46_v25, %v35_v27 }
  0x9b   :  { %57 = vperm.xlu1 %103, %v47_v26   ;;  %v51_v29 = vmul.f32 %v47_v26, %v30_v12  ;;  %v52_v32 = vmul.f32 %v48_v30, %v30_v12 }
  0x9d   :  { %v53_v31 = vsub.f32 %v49_v28, %v51_v29  ;;  %v54_v34 = vsub.f32 %v50_v33, %v52_v32 }
  0x9f   :  { %69 = vperm.xlu2 %104, %v53_v31  }
  0xa3   :  { %62 = vperm.xlu1 %103, %v48_v30  }
  0xa7   :  { %74 = vperm.xlu2 %104, %v54_v34  }
  0xf9   :  { %v70_v35 = vpop.permute.xlu2 %69 }
 0x101   :  { %v75_v41 = vpop.permute.xlu2 %74 }
 0x10d   :  { %v58_v36 = vpop.permute.xlu1 %57 }
 0x10e   :  { %v65_v37 = vmul.f32 %v58_v36, %v15_v0 }
 0x110   :  { %v77_v38 = vadd.f32 %v70_v35, %v65_v37 }
 0x112   :  { %79 = vst [vmem:[#allocation2] sm:$0xf] %v77_v38 }
 0x115   :  { %v63_v39 = vpop.permute.xlu1 %62 }
 0x116   :  { %v66_v40 = vmul.f32 %v63_v39, %v16_v1 }
 0x118   :  { %v78_v42 = vadd.f32 %v75_v41, %v66_v40 }
 0x11a   :  { %80 = vst [vmem:[#allocation2 + $0x4] sm:$0xf] %v78_v42 }
 0x11b   :  { %93 = dma.vmem_to_hbm [thread:$0]  %s86_s23, 128, %s88_s26, [#allocation3], %s136_s2, %s136_s2, %s137_s27  }
 0x11c   :  { %132 = dma.done.wait [#allocation3], 128  }
 0x11d   :  { %133 = vsyncadd [#allocation3], 4294967168 }
 0x11e   :  { %98 = vsyncpa [#allocation3], 1 }

</bundles_post_ra>
